<compile_context>
chip_gen: v7x
topology: tpu7x:2x2x1
jax: 0.10.0
libtpu: 0.0.40
codegen_flags: <defaults>
</compile_context>

<pallas_src>
import functools

import jax
import jax.numpy as jnp
from jax.experimental import pallas as pl
from jax.experimental.pallas import tpu as pltpu


def _round_up(x, m):
    return ((x + m - 1) // m) * m


def _vmem_limit_bytes():
    """Generation-gated scoped-VMEM limit, kept below physical VMEM."""
    try:
        kind = jax.devices()[0].device_kind.lower()
    except Exception:
        kind = ""
    if "v5" in kind or "v6" in kind:
        return 96 * 1024 * 1024      # v5e/v6e: 128 MiB physical VMEM
    return 48 * 1024 * 1024          # v7x (and unknown): 64 MiB / TensorCore


def _mlp_kernel(x_ref, w1_ref, b1_ref, w2_ref, b2_ref, w3_ref, b3_ref, o_ref):
    # Whole fc1 -> ReLU -> fc2 -> ReLU -> fc3 hot path stays in VMEM; the
    # intermediates h1/h2 never touch HBM.  Matmul operands are bf16 (MXU peak
    # path) with f32 accumulation; bias-add + ReLU stay in f32.
    x = x_ref[...]                                                      # (TM, Dp) bf16
    h1 = jnp.dot(x, w1_ref[...], preferred_element_type=jnp.float32) + b1_ref[...]
    h1 = jnp.maximum(h1, 0.0).astype(jnp.bfloat16)                      # (TM, Hp)
    h2 = jnp.dot(h1, w2_ref[...], preferred_element_type=jnp.float32) + b2_ref[...]
    h2 = jnp.maximum(h2, 0.0).astype(jnp.bfloat16)                      # (TM, Hp)
    out = jnp.dot(h2, w3_ref[...], preferred_element_type=jnp.float32) + b3_ref[...]
    o_ref[...] = out.astype(o_ref.dtype)                                # (TM, Cp)


def init_params(key, input_size, hidden_size, num_classes):
    """Synthetic init matching torch nn.Linear default U(-1/sqrt(fan_in), +).
    Weights are stored (in_features, out_features) = nn.Linear.weight^T."""
    ks = jax.random.split(key, 6)

    def lin(kw, kb, fan_in, fan_out):
        bound = 1.0 / jnp.sqrt(fan_in)
        w = jax.random.uniform(kw, (fan_in, fan_out), jnp.float32, -bound, bound)
        b = jax.random.uniform(kb, (fan_out,), jnp.float32, -bound, bound)
        return w, b

    w1, b1 = lin(ks[0], ks[1], input_size, hidden_size)
    w2, b2 = lin(ks[2], ks[3], hidden_size, hidden_size)
    w3, b3 = lin(ks[4], ks[5], hidden_size, num_classes)
    return (w1, b1, w2, b2, w3, b3)


def prepare_params(params):
    """One-time weight-stationary prep: pad every feature dim to a multiple of
    128 (dense MXU lanes, unmasked output stores) and cast weights to bf16.
    Call once and cache across forwards — NOT per call."""
    w1, b1, w2, b2, w3, b3 = params
    D, H = w1.shape
    C = w3.shape[1]
    Dp, Hp, Cp = _round_up(D, 128), _round_up(H, 128), _round_up(C, 128)
    bf, f32 = jnp.bfloat16, jnp.float32

    w1p = jnp.pad(w1.astype(bf), ((0, Dp - D), (0, Hp - H)))
    w2p = jnp.pad(w2.astype(bf), ((0, Hp - H), (0, Hp - H)))
    w3p = jnp.pad(w3.astype(bf), ((0, Hp - H), (0, Cp - C)))
    b1p = jnp.pad(b1.reshape(1, -1).astype(f32), ((0, 0), (0, Hp - H)))
    b2p = jnp.pad(b2.reshape(1, -1).astype(f32), ((0, 0), (0, Hp - H)))
    b3p = jnp.pad(b3.reshape(1, -1).astype(f32), ((0, 0), (0, Cp - C)))
    return (w1p, b1p, w2p, b2p, w3p, b3p), (D, H, C)


@functools.partial(
    jax.jit,
    static_argnames=("num_classes", "tm_target", "single_buffer_weights", "out_dtype"),
)
def _forward_impl(x, w1p, b1p, w2p, b2p, w3p, b3p, *, num_classes, tm_target,
                  single_buffer_weights, out_dtype):
    B = x.shape[0]
    x2d = x.reshape(B, -1)                          # same flatten as torch reshape
    D = x2d.shape[1]
    Dp, Hp = w1p.shape
    Cp = w3p.shape[1]
    if D > Dp:
        raise ValueError(f"flattened input dim {D} > prepared dim {Dp}")

    # Batch tiling: pad only to the 8-sublane boundary; a ragged last tile (if
    # TM does not divide B8) is masked by Pallas, not materialized.
    B8 = _round_up(B, 8)
    TM = min(tm_target, B8)
    if 16 <= B8 <= tm_target:
        # Split into >=2 grid steps so the "parallel" batch axis can occupy
        # both TensorCores on v7x (no effect on single-TC v5e/v6e).
        TM = _round_up(pl.cdiv(B8, 2), 8)
    grid = (pl.cdiv(B8, TM),)

    xp = jnp.pad(x2d.astype(jnp.bfloat16), ((0, B8 - B), (0, Dp - D)))

    vmem_limit = _vmem_limit_bytes()

    # Rough VMEM budget for the resident-weights strategy.
    wbuf = 1 if single_buffer_weights else 2
    out_isz = jnp.dtype(out_dtype).itemsize
    vmem_needed = (
        2 * wbuf * (Dp * Hp + Hp * Hp + Hp * Cp)    # bf16 weights
        + 4 * wbuf * (2 * Hp + Cp)                  # f32 biases
        + 2 * (2 * TM * Dp)                         # double-buffered bf16 x tiles
        + 2 * (out_isz * TM * Cp)                   # double-buffered out tiles
        + 4 * 2 * TM * Hp                           # f32 h1/h2 intermediates
    )
    if vmem_needed > vmem_limit:
        # TODO(synk): add a hidden/contraction-tiled variant (K/N tiles >= 256 on
        # v6e/v7x) with an f32 accumulator scratch + pl.when init/finalize for
        # models whose resident weights exceed the per-core VMEM budget.
        raise NotImplementedError(
            f"resident-weight MLP needs ~{vmem_needed >> 20} MiB VMEM "
            f"(> {vmem_limit >> 20} MiB limit); hidden-dim tiling not implemented")

    w_mode = pl.Buffered(1) if single_buffer_weights else None
    resident = lambda i: (0, 0)                     # same block every grid step

    def _resident_spec(shape):
        return pl.BlockSpec(shape, resident, pipeline_mode=w_mode)

    out_padded = pl.pallas_call(
        _mlp_kernel,
        out_shape=jax.ShapeDtypeStruct((B8, Cp), out_dtype),
        grid=grid,
        in_specs=[
            pl.BlockSpec((TM, Dp), lambda i: (i, 0)),   # x tile, pipelined over batch
            _resident_spec((Dp, Hp)),                   # w1 (VMEM-resident, 1 buffer)
            _resident_spec((1, Hp)),                    # b1
            _resident_spec((Hp, Hp)),                   # w2
            _resident_spec((1, Hp)),                    # b2
            _resident_spec((Hp, Cp)),                   # w3
            _resident_spec((1, Cp)),                    # b3
        ],
        out_specs=pl.BlockSpec((TM, Cp), lambda i: (i, 0)),
        compiler_params=pltpu.CompilerParams(
            dimension_semantics=("parallel",),          # batch tiles independent
            vmem_limit_bytes=vmem_limit,
        ),
    )(xp, w1p, b1p, w2p, b2p, w3p, b3p)

    return out_padded[:B, :num_classes]


def single_mlp_forward(x, prepared, dims, *, tm_target=1024,
                       single_buffer_weights=True, out_dtype=jnp.float32):
    """Forward matching torch singleMLP: reshape(B,-1) -> fc1 -> ReLU -> fc2 ->
    ReLU -> fc3.  `prepared`, `dims` come from prepare_params() (cache them).

    Note: matmul operands run in bf16 with f32 accumulation (standard TPU MXU
    path), so expect ~1e-2 relative deviation from a pure-f32 torch reference.
    Pass out_dtype=jnp.bfloat16 if downstream accepts it (halves output HBM
    traffic; the Cp-padded f32 tile is mostly padding for small num_classes).
    """
    w1p, b1p, w2p, b2p, w3p, b3p = prepared
    _, _, C = dims
    return _forward_impl(x, w1p, b1p, w2p, b2p, w3p, b3p,
                         num_classes=C, tm_target=tm_target,
                         single_buffer_weights=single_buffer_weights,
                         out_dtype=out_dtype)


if __name__ == "__main__":
    key = jax.random.PRNGKey(0)
    kx, kp = jax.random.split(key)

    # Small shapes consistent with the module: x is (B, C, H, W), flattened to
    # input_size = C*H*W inside forward.  (At shapes this tiny a plain jnp dot
    # chain would beat any kernel; the Pallas path pays off once weight
    # residency and batch pipelining have real work to amortize.)
    B, C, H, W = 2, 4, 4, 4
    input_size = C * H * W          # 64
    hidden_size = 32
    num_classes = 8

    x = jax.random.normal(kx, (B, C, H, W), jnp.float32)
    params = init_params(kp, input_size, hidden_size, num_classes)
    prepared, dims = prepare_params(params)   # one-time, cached across calls

    try:
        out = jax.block_until_ready(single_mlp_forward(x, prepared, dims))
    except Exception:
        # pl.Buffered(1) single-buffering may be unavailable on older jax/libtpu;
        # fall back to default double-buffered resident weights (same math).
        out = jax.block_until_ready(
            single_mlp_forward(x, prepared, dims, single_buffer_weights=False))

    # Pure-JAX reference mirroring the kernel's bf16-operand / f32-accumulate math.
    w1, b1, w2, b2, w3, b3 = params
    bf = jnp.bfloat16
    xr = x.reshape(B, -1)
    h1 = jnp.maximum(
        jnp.dot(xr.astype(bf), w1.astype(bf), preferred_element_type=jnp.float32)
        + b1.reshape(1, -1), 0.0)
    h2 = jnp.maximum(
        jnp.dot(h1.astype(bf), w2.astype(bf), preferred_element_type=jnp.float32)
        + b2.reshape(1, -1), 0.0)
    ref = (jnp.dot(h2.astype(bf), w3.astype(bf), preferred_element_type=jnp.float32)
           + b3.reshape(1, -1))

    assert out.shape == (B, num_classes)
    assert out.dtype == jnp.float32
    err = float(jnp.max(jnp.abs(out - ref)))
    assert jnp.allclose(out, ref, atol=2e-3, rtol=2e-3), err

    print("KERNEL_OK")
</pallas_src>

<mosaic_0001>
module attributes {stable_mosaic.version = 11 : i64} {
  func.func @_mlp_kernel(%arg0: i32, %arg1: memref<8x128xbf16, #tpu.memory_space<vmem>>, %arg2: memref<128x128xbf16, #tpu.memory_space<vmem>>, %arg3: memref<1x128xf32, #tpu.memory_space<vmem>>, %arg4: memref<128x128xbf16, #tpu.memory_space<vmem>>, %arg5: memref<1x128xf32, #tpu.memory_space<vmem>>, %arg6: memref<128x128xbf16, #tpu.memory_space<vmem>>, %arg7: memref<1x128xf32, #tpu.memory_space<vmem>>, %arg8: memref<8x128xf32, #tpu.memory_space<vmem>>) attributes {dimension_semantics = [#tpu.dimension_semantics<parallel>], iteration_bounds = array<i64: 1>, scalar_prefetch = 0 : i64, scratch_operands = 0 : i64, tpu.core_type = #tpu.core_type<tc>, window_params = [{transform_indices = @transform_0, window_bounds = array<i64: 8, 128>}, {pipeline_mode = #tpu.pipeline_mode<synchronous>, transform_indices = @transform_1, window_bounds = array<i64: 128, 128>}, {pipeline_mode = #tpu.pipeline_mode<synchronous>, transform_indices = @transform_2, window_bounds = array<i64: 1, 128>}, {pipeline_mode = #tpu.pipeline_mode<synchronous>, transform_indices = @transform_3, window_bounds = array<i64: 128, 128>}, {pipeline_mode = #tpu.pipeline_mode<synchronous>, transform_indices = @transform_4, window_bounds = array<i64: 1, 128>}, {pipeline_mode = #tpu.pipeline_mode<synchronous>, transform_indices = @transform_5, window_bounds = array<i64: 128, 128>}, {pipeline_mode = #tpu.pipeline_mode<synchronous>, transform_indices = @transform_6, window_bounds = array<i64: 1, 128>}, {transform_indices = @transform_7, window_bounds = array<i64: 8, 128>}]} {
    %c0 = arith.constant 0 : index
    %c0_0 = arith.constant 0 : index
    %0 = vector.load %arg1[%c0, %c0_0] : memref<8x128xbf16, #tpu.memory_space<vmem>>, vector<8x128xbf16>
    %c0_1 = arith.constant 0 : index
    %c0_2 = arith.constant 0 : index
    %1 = vector.load %arg2[%c0_1, %c0_2] : memref<128x128xbf16, #tpu.memory_space<vmem>>, vector<128x128xbf16>
    %cst = arith.constant dense<0.000000e+00> : vector<8x128xf32>
    %2 = tpu.matmul %0, %1, %cst {dimension_numbers = #tpu.dot_dimension_numbers<[1], [0], [0], [1], [0, 0, 1, 1], [], []>} : vector<8x128xbf16>, vector<128x128xbf16>, vector<8x128xf32> -> vector<8x128xf32>
    %c0_3 = arith.constant 0 : index
    %c0_4 = arith.constant 0 : index
    %3 = vector.load %arg3[%c0_3, %c0_4] : memref<1x128xf32, #tpu.memory_space<vmem>>, vector<1x128xf32>
    %4 = vector.broadcast %3 : vector<1x128xf32> to vector<8x128xf32>
    %5 = arith.addf %2, %4 : vector<8x128xf32>
    %cst_5 = arith.constant 0.000000e+00 : f32
    %6 = vector.broadcast %cst_5 : f32 to vector<8x128xf32>
    %7 = arith.maximumf %5, %6 : vector<8x128xf32>
    %8 = arith.truncf %7 : vector<8x128xf32> to vector<8x128xbf16>
    %c0_6 = arith.constant 0 : index
    %c0_7 = arith.constant 0 : index
    %9 = vector.load %arg4[%c0_6, %c0_7] : memref<128x128xbf16, #tpu.memory_space<vmem>>, vector<128x128xbf16>
    %cst_8 = arith.constant dense<0.000000e+00> : vector<8x128xf32>
    %10 = tpu.matmul %8, %9, %cst_8 {dimension_numbers = #tpu.dot_dimension_numbers<[1], [0], [0], [1], [0, 0, 1, 1], [], []>} : vector<8x128xbf16>, vector<128x128xbf16>, vector<8x128xf32> -> vector<8x128xf32>
    %c0_9 = arith.constant 0 : index
    %c0_10 = arith.constant 0 : index
    %11 = vector.load %arg5[%c0_9, %c0_10] : memref<1x128xf32, #tpu.memory_space<vmem>>, vector<1x128xf32>
    %12 = vector.broadcast %11 : vector<1x128xf32> to vector<8x128xf32>
    %13 = arith.addf %10, %12 : vector<8x128xf32>
    %cst_11 = arith.constant 0.000000e+00 : f32
    %14 = vector.broadcast %cst_11 : f32 to vector<8x128xf32>
    %15 = arith.maximumf %13, %14 : vector<8x128xf32>
    %16 = arith.truncf %15 : vector<8x128xf32> to vector<8x128xbf16>
    %c0_12 = arith.constant 0 : index
    %c0_13 = arith.constant 0 : index
    %17 = vector.load %arg6[%c0_12, %c0_13] : memref<128x128xbf16, #tpu.memory_space<vmem>>, vector<128x128xbf16>
    %cst_14 = arith.constant dense<0.000000e+00> : vector<8x128xf32>
    %18 = tpu.matmul %16, %17, %cst_14 {dimension_numbers = #tpu.dot_dimension_numbers<[1], [0], [0], [1], [0, 0, 1, 1], [], []>} : vector<8x128xbf16>, vector<128x128xbf16>, vector<8x128xf32> -> vector<8x128xf32>
    %c0_15 = arith.constant 0 : index
    %c0_16 = arith.constant 0 : index
    %19 = vector.load %arg7[%c0_15, %c0_16] : memref<1x128xf32, #tpu.memory_space<vmem>>, vector<1x128xf32>
    %20 = vector.broadcast %19 : vector<1x128xf32> to vector<8x128xf32>
    %21 = arith.addf %18, %20 : vector<8x128xf32>
    %c0_17 = arith.constant 0 : index
    %c0_18 = arith.constant 0 : index
    %22 = vector.load %arg8[%c0_17, %c0_18] : memref<8x128xf32, #tpu.memory_space<vmem>>, vector<8x128xf32>
    tpu.vector_store %arg8[%c0_17, %c0_18], %21 {strides = array<i32>} : memref<8x128xf32, #tpu.memory_space<vmem>>, vector<8x128xf32>,
    return
  }
  func.func @transform_0(%arg0: i32) -> (i32, i32) {
    %c0_i32 = arith.constant 0 : i32
    %c0_i32_0 = arith.constant 0 : i32
    return %arg0, %c0_i32 : i32, i32
  }
  func.func @transform_1(%arg0: i32) -> (i32, i32) {
    %c0_i32 = arith.constant 0 : i32
    %c0_i32_0 = arith.constant 0 : i32
    %c0_i32_1 = arith.constant 0 : i32
    return %c0_i32, %c0_i32_0 : i32, i32
  }
  func.func @transform_2(%arg0: i32) -> (i32, i32) {
    %c0_i32 = arith.constant 0 : i32
    %c0_i32_0 = arith.constant 0 : i32
    %c0_i32_1 = arith.constant 0 : i32
    return %c0_i32, %c0_i32_0 : i32, i32
  }
  func.func @transform_3(%arg0: i32) -> (i32, i32) {
    %c0_i32 = arith.constant 0 : i32
    %c0_i32_0 = arith.constant 0 : i32
    %c0_i32_1 = arith.constant 0 : i32
    return %c0_i32, %c0_i32_0 : i32, i32
  }
  func.func @transform_4(%arg0: i32) -> (i32, i32) {
    %c0_i32 = arith.constant 0 : i32
    %c0_i32_0 = arith.constant 0 : i32
    %c0_i32_1 = arith.constant 0 : i32
    return %c0_i32, %c0_i32_0 : i32, i32
  }
  func.func @transform_5(%arg0: i32) -> (i32, i32) {
    %c0_i32 = arith.constant 0 : i32
    %c0_i32_0 = arith.constant 0 : i32
    %c0_i32_1 = arith.constant 0 : i32
    return %c0_i32, %c0_i32_0 : i32, i32
  }
  func.func @transform_6(%arg0: i32) -> (i32, i32) {
    %c0_i32 = arith.constant 0 : i32
    %c0_i32_0 = arith.constant 0 : i32
    %c0_i32_1 = arith.constant 0 : i32
    return %c0_i32, %c0_i32_0 : i32, i32
  }
  func.func @transform_7(%arg0: i32) -> (i32, i32) {
    %c0_i32 = arith.constant 0 : i32
    %c0_i32_0 = arith.constant 0 : i32
    return %arg0, %c0_i32 : i32, i32
  }
}

module attributes {stable_mosaic.version = 11 : i64} {
  func.func @_mlp_kernel(%arg0: i32, %arg1: memref<8x128xbf16, #tpu.memory_space<vmem>>, %arg2: memref<128x128xbf16, #tpu.memory_space<vmem>>, %arg3: memref<1x128xf32, #tpu.memory_space<vmem>>, %arg4: memref<128x128xbf16, #tpu.memory_space<vmem>>, %arg5: memref<1x128xf32, #tpu.memory_space<vmem>>, %arg6: memref<128x128xbf16, #tpu.memory_space<vmem>>, %arg7: memref<1x128xf32, #tpu.memory_space<vmem>>, %arg8: memref<8x128xf32, #tpu.memory_space<vmem>>) attributes {dimension_semantics = [#tpu.dimension_semantics<parallel>], iteration_bounds = array<i64: 1>, scalar_prefetch = 0 : i64, scratch_operands = 0 : i64, tpu.core_type = #tpu.core_type<tc>, window_params = [{transform_indices = @transform_0, window_bounds = array<i64: 8, 128>}, {pipeline_mode = #tpu.pipeline_mode<synchronous>, transform_indices = @transform_1, window_bounds = array<i64: 128, 128>}, {pipeline_mode = #tpu.pipeline_mode<synchronous>, transform_indices = @transform_2, window_bounds = array<i64: 1, 128>}, {pipeline_mode = #tpu.pipeline_mode<synchronous>, transform_indices = @transform_3, window_bounds = array<i64: 128, 128>}, {pipeline_mode = #tpu.pipeline_mode<synchronous>, transform_indices = @transform_4, window_bounds = array<i64: 1, 128>}, {pipeline_mode = #tpu.pipeline_mode<synchronous>, transform_indices = @transform_5, window_bounds = array<i64: 128, 128>}, {pipeline_mode = #tpu.pipeline_mode<synchronous>, transform_indices = @transform_6, window_bounds = array<i64: 1, 128>}, {transform_indices = @transform_7, window_bounds = array<i64: 8, 128>}]} {
    %c0 = arith.constant 0 : index
    %c0_0 = arith.constant 0 : index
    %0 = vector.load %arg1[%c0, %c0_0] : memref<8x128xbf16, #tpu.memory_space<vmem>>, vector<8x128xbf16>
    %c0_1 = arith.constant 0 : index
    %c0_2 = arith.constant 0 : index
    %1 = vector.load %arg2[%c0_1, %c0_2] : memref<128x128xbf16, #tpu.memory_space<vmem>>, vector<128x128xbf16>
    %cst = arith.constant dense<0.000000e+00> : vector<8x128xf32>
    %2 = tpu.matmul %0, %1, %cst {dimension_numbers = #tpu.dot_dimension_numbers<[1], [0], [0], [1], [0, 0, 1, 1], [], []>} : vector<8x128xbf16>, vector<128x128xbf16>, vector<8x128xf32> -> vector<8x128xf32>
    %c0_3 = arith.constant 0 : index
    %c0_4 = arith.constant 0 : index
    %3 = vector.load %arg3[%c0_3, %c0_4] : memref<1x128xf32, #tpu.memory_space<vmem>>, vector<1x128xf32>
    %4 = vector.broadcast %3 : vector<1x128xf32> to vector<8x128xf32>
    %5 = arith.addf %2, %4 : vector<8x128xf32>
    %cst_5 = arith.constant 0.000000e+00 : f32
    %6 = vector.broadcast %cst_5 : f32 to vector<8x128xf32>
    %7 = arith.maximumf %5, %6 : vector<8x128xf32>
    %8 = arith.truncf %7 : vector<8x128xf32> to vector<8x128xbf16>
    %c0_6 = arith.constant 0 : index
    %c0_7 = arith.constant 0 : index
    %9 = vector.load %arg4[%c0_6, %c0_7] : memref<128x128xbf16, #tpu.memory_space<vmem>>, vector<128x128xbf16>
    %cst_8 = arith.constant dense<0.000000e+00> : vector<8x128xf32>
    %10 = tpu.matmul %8, %9, %cst_8 {dimension_numbers = #tpu.dot_dimension_numbers<[1], [0], [0], [1], [0, 0, 1, 1], [], []>} : vector<8x128xbf16>, vector<128x128xbf16>, vector<8x128xf32> -> vector<8x128xf32>
    %c0_9 = arith.constant 0 : index
    %c0_10 = arith.constant 0 : index
    %11 = vector.load %arg5[%c0_9, %c0_10] : memref<1x128xf32, #tpu.memory_space<vmem>>, vector<1x128xf32>
    %12 = vector.broadcast %11 : vector<1x128xf32> to vector<8x128xf32>
    %13 = arith.addf %10, %12 : vector<8x128xf32>
    %cst_11 = arith.constant 0.000000e+00 : f32
    %14 = vector.broadcast %cst_11 : f32 to vector<8x128xf32>
    %15 = arith.maximumf %13, %14 : vector<8x128xf32>
    %16 = arith.truncf %15 : vector<8x128xf32> to vector<8x128xbf16>
    %c0_12 = arith.constant 0 : index
    %c0_13 = arith.constant 0 : index
    %17 = vector.load %arg6[%c0_12, %c0_13] : memref<128x128xbf16, #tpu.memory_space<vmem>>, vector<128x128xbf16>
    %cst_14 = arith.constant dense<0.000000e+00> : vector<8x128xf32>
    %18 = tpu.matmul %16, %17, %cst_14 {dimension_numbers = #tpu.dot_dimension_numbers<[1], [0], [0], [1], [0, 0, 1, 1], [], []>} : vector<8x128xbf16>, vector<128x128xbf16>, vector<8x128xf32> -> vector<8x128xf32>
    %c0_15 = arith.constant 0 : index
    %c0_16 = arith.constant 0 : index
    %19 = vector.load %arg7[%c0_15, %c0_16] : memref<1x128xf32, #tpu.memory_space<vmem>>, vector<1x128xf32>
    %20 = vector.broadcast %19 : vector<1x128xf32> to vector<8x128xf32>
    %21 = arith.addf %18, %20 : vector<8x128xf32>
    %c0_17 = arith.constant 0 : index
    %c0_18 = arith.constant 0 : index
    %22 = vector.load %arg8[%c0_17, %c0_18] : memref<8x128xf32, #tpu.memory_space<vmem>>, vector<8x128xf32>
    tpu.vector_store %arg8[%c0_17, %c0_18], %21 {strides = array<i32>} : memref<8x128xf32, #tpu.memory_space<vmem>>, vector<8x128xf32>,
    return
  }
  func.func @transform_0(%arg0: i32) -> (i32, i32) {
    %c0_i32 = arith.constant 0 : i32
    %c0_i32_0 = arith.constant 0 : i32
    return %arg0, %c0_i32 : i32, i32
  }
  func.func @transform_1(%arg0: i32) -> (i32, i32) {
    %c0_i32 = arith.constant 0 : i32
    %c0_i32_0 = arith.constant 0 : i32
    %c0_i32_1 = arith.constant 0 : i32
    return %c0_i32, %c0_i32_0 : i32, i32
  }
  func.func @transform_2(%arg0: i32) -> (i32, i32) {
    %c0_i32 = arith.constant 0 : i32
    %c0_i32_0 = arith.constant 0 : i32
    %c0_i32_1 = arith.constant 0 : i32
    return %c0_i32, %c0_i32_0 : i32, i32
  }
  func.func @transform_3(%arg0: i32) -> (i32, i32) {
    %c0_i32 = arith.constant 0 : i32
    %c0_i32_0 = arith.constant 0 : i32
    %c0_i32_1 = arith.constant 0 : i32
    return %c0_i32, %c0_i32_0 : i32, i32
  }
  func.func @transform_4(%arg0: i32) -> (i32, i32) {
    %c0_i32 = arith.constant 0 : i32
    %c0_i32_0 = arith.constant 0 : i32
    %c0_i32_1 = arith.constant 0 : i32
    return %c0_i32, %c0_i32_0 : i32, i32
  }
  func.func @transform_5(%arg0: i32) -> (i32, i32) {
    %c0_i32 = arith.constant 0 : i32
    %c0_i32_0 = arith.constant 0 : i32
    %c0_i32_1 = arith.constant 0 : i32
    return %c0_i32, %c0_i32_0 : i32, i32
  }
  func.func @transform_6(%arg0: i32) -> (i32, i32) {
    %c0_i32 = arith.constant 0 : i32
    %c0_i32_0 = arith.constant 0 : i32
    %c0_i32_1 = arith.constant 0 : i32
    return %c0_i32, %c0_i32_0 : i32, i32
  }
  func.func @transform_7(%arg0: i32) -> (i32, i32) {
    %c0_i32 = arith.constant 0 : i32
    %c0_i32_0 = arith.constant 0 : i32
    return %arg0, %c0_i32 : i32, i32
  }
}

</mosaic_0001>

<bundles_post_ra>
// kernel: _forward_impl.1
= control target key start
LH: loop header
LB: loop body
LE: loop exit
PB: predicated region body
PF: predicated region fallthrough
CT: control target
= control target key end

     0   :  { %12 = vsyncpa [#allocation3], 0  ;;  %s731_s0 = inlined_call_operand.vmem [shape: bf16[8,128], index: 0, kind: input, shape index: {}]   ;;  %s732_s1 = inlined_call_operand.vmem [shape: bf16[128,128], index: 1, kind: input, shape index: {}]   ;;  %s733_s2 = inlined_call_operand.vmem [shape: f32[1,128], index: 2, kind: input, shape index: {}]   ;;  %s734_s3 = inlined_call_operand.hbm [shape: bf16[128,128], index: 3, kind: input, shape index: {}]   ;;  %s735_s4 = inlined_call_operand.vmem [shape: f32[1,128], index: 4, kind: input, shape index: {}]   ;;  %s736_s5 = inlined_call_operand.hbm [shape: bf16[128,128], index: 5, kind: input, shape index: {}]   ;;  %s737_s6 = inlined_call_operand.vmem [shape: f32[1,128], index: 6, kind: input, shape index: {}]   ;;  %s738_s7 = inlined_call_operand.vmem [shape: f32[8,128], index: 7, kind: output, shape index: {}]  }
   0x1   :  { %13 = vsyncpa [#allocation5], 0  ;;  %s592_s24 = smov [#allocation2]   ;;  %s544_s28 = scalar_lea.hbm %s734_s3, 1024 }
   0x2   :  { %s25_s25 = sshll.u32 %s592_s24, 4  ;;  %p545_p0 = scmp.ne.s32.totalorder %s734_s3, %s544_s28  ;;  %s26_s25 = int_to_ptr.vmem [resolvable:$true] %s25_s25 }
   0x3   :  { %p548_p1 = scmp.lt.u32.totalorder %s544_s28, %s734_s3 }
   0x5   :  { %p550_p2 = pnand %p548_p1, %p545_p0 }
   0x7   :  { %553 = shalt.err (!%p550_p2)
}
   0x8   :  { %s554_s10 = scalar_lea.vmem %s26_s25, 1024  ;;  %p559_p4 = scmp.lt.s32.totalorder %s26_s25, %s26_s25 }
   0x9   :  { %p555_p3 = scmp.ne.s32.totalorder %s26_s25, %s554_s10  ;;  %p560_p5 = scmp.lt.s32.totalorder %s554_s10, %s554_s10 }
   0xb   :  { %p561_p6 = por %p560_p5, %p559_p4 }
   0xd   :  { %p562_p7 = pnand %p561_p6, %p555_p3 }
   0xf   :  { %565 = shalt.err (!%p562_p7)
}
  0x10   :  { %s593_s11 = smov 64   ;;  %s594_s12 = smov 4  }
  0x11   :  { %31 = dma.hbm_to_vmem [thread:$0]  %s734_s3, 1024, %s26_s25, [#allocation3], %s593_s11, %s593_s11, %s594_s12  }
  0x12   :  { %s595_s15 = smov [#allocation4]   ;;  %s566_s19 = scalar_lea.hbm %s736_s5, 1024 }
  0x13   :  { %s39_s16 = sshll.u32 %s595_s15, 4  ;;  %p567_p8 = scmp.ne.s32.totalorder %s736_s5, %s566_s19  ;;  %s40_s16 = int_to_ptr.vmem [resolvable:$true] %s39_s16 }
  0x14   :  { %p570_p9 = scmp.lt.u32.totalorder %s566_s19, %s736_s5 }
  0x16   :  { %p572_p10 = pnand %p570_p9, %p567_p8 }
  0x18   :  { %575 = shalt.err (!%p572_p10)
}
  0x19   :  { %s576_s24 = scalar_lea.vmem %s40_s16, 1024  ;;  %p581_p12 = scmp.lt.s32.totalorder %s40_s16, %s40_s16 }
  0x1a   :  { %p577_p11 = scmp.ne.s32.totalorder %s40_s16, %s576_s24  ;;  %p582_p13 = scmp.lt.s32.totalorder %s576_s24, %s576_s24 }
  0x1c   :  { %p583_p0 = por %p582_p13, %p581_p12 }
  0x1e   :  { %p584_p1 = pnand %p583_p0, %p577_p11 }
  0x20   :  { %587 = shalt.err (!%p584_p1)
}
  0x21   :  { %45 = dma.hbm_to_vmem [thread:$0]  %s736_s5, 1024, %s40_s16, [#allocation5], %s593_s11, %s593_s11, %s594_s12  }
  0x22   :  { %588 = dma.done.wait [#allocation3], 1024  }
  0x23   :  { %589 = vsyncadd [#allocation3], 4294966272 }
  0x24   :  { %590 = dma.done.wait [#allocation5], 1024  }
  0x25   :  { %591 = vsyncadd [#allocation5], 4294966272  ;;  %v596_v0 = vmov 0.0   ;;  %vm597_vm0 = vmmov 0   ;;  %v520_v1 = vld [vmem:[%s732_s1] sm:$0xff]   ;;  %v521_v2 = vld [vmem:[%s732_s1 + $0x8] sm:$0xff]  }
  0x26   :  { %454 = vmatprep.subr.bf16.mxu0 %v596_v0  ;;  %470 = vmatprep.mubr.msk.bf16.mxu0 %vm597_vm0, %v596_v0  ;;  %v522_v3 = vld [vmem:[%s732_s1 + $0x10] sm:$0xff]   ;;  %v528_v4 = vld [vmem:[#allocation2] sm:$0xff]   ;;  %v523_v5 = vld [vmem:[%s732_s1 + $0x18] sm:$0xff]  }
  0x27   :  { %474 = vmatprep.subr.bf16.mxu1 %v596_v0  ;;  %490 = vmatprep.mubr.msk.bf16.mxu1 %vm597_vm0, %v596_v0  ;;  %v529_v6 = vld [vmem:[#allocation2 + $0x8] sm:$0xff]   ;;  %v524_v7 = vld [vmem:[%s732_s1 + $0x20] sm:$0xff]   ;;  %v530_v8 = vld [vmem:[#allocation2 + $0x10] sm:$0xff]  }
  0x28   :  { %455 = vmatpush3.bf16.msra.mxu0 %v520_v1  ;;  %475 = vmatpush3.bf16.msra.mxu1 %v528_v4  ;;  %v525_v9 = vld [vmem:[%s732_s1 + $0x28] sm:$0xff]   ;;  %v531_v10 = vld [vmem:[#allocation2 + $0x18] sm:$0xff]   ;;  %v526_v11 = vld [vmem:[%s732_s1 + $0x30] sm:$0xff]  }
  0x29   :  { %456 = vmatprep.subr.bf16.mxu0 %v596_v0  ;;  %476 = vmatprep.subr.bf16.mxu1 %v596_v0  ;;  %v532_v12 = vld [vmem:[#allocation2 + $0x20] sm:$0xff]   ;;  %v527_v13 = vld [vmem:[%s732_s1 + $0x38] sm:$0xff]   ;;  %v533_v14 = vld [vmem:[#allocation2 + $0x28] sm:$0xff]  }
  0x2a   :  { %v55_v15 = vld [vmem:[%s731_s0] sm:$0xf]  ;;  %v534_v16 = vld [vmem:[#allocation2 + $0x30] sm:$0xff]   ;;  %v535_v17 = vld [vmem:[#allocation2 + $0x38] sm:$0xff]  }
  0x2b   :  { %v536_v18 = vld [vmem:[#allocation4] sm:$0xff]   ;;  %v537_v19 = vld [vmem:[#allocation4 + $0x8] sm:$0xff]   ;;  %v538_v20 = vld [vmem:[#allocation4 + $0x10] sm:$0xff]  }
  0x2c   :  { %457 = vmatpush3.bf16.msra.mxu0 %v521_v2  ;;  %477 = vmatpush3.bf16.msra.mxu1 %v529_v6  ;;  %v539_v21 = vld [vmem:[#allocation4 + $0x18] sm:$0xff]   ;;  %v540_v22 = vld [vmem:[#allocation4 + $0x20] sm:$0xff]   ;;  %v541_v23 = vld [vmem:[#allocation4 + $0x28] sm:$0xff]  }
  0x2d   :  { %458 = vmatprep.subr.bf16.mxu0 %v596_v0  ;;  %478 = vmatprep.subr.bf16.mxu1 %v596_v0  ;;  %v400_v24 = vld [vmem:[%s733_s2] ss:$0 sm:$0xff]  ;;  %v542_v32 = vld [vmem:[#allocation4 + $0x30] sm:$0xff]   ;;  %v543_v33 = vld [vmem:[#allocation4 + $0x38] sm:$0xff]  }
  0x2e   :  { %v409_v34 = vld [vmem:[%s735_s4] ss:$0 sm:$0xff] }
  0x2f   :  { %v418_v42 = vld [vmem:[%s737_s6] ss:$0 sm:$0xff] }
  0x30   :  { %459 = vmatpush3.bf16.msra.mxu0 %v522_v3  ;;  %479 = vmatpush3.bf16.msra.mxu1 %v530_v8 }
  0x31   :  { %460 = vmatprep.subr.bf16.mxu0 %v596_v0  ;;  %480 = vmatprep.subr.bf16.mxu1 %v596_v0 }
  0x34   :  { %461 = vmatpush3.bf16.msra.mxu0 %v523_v5  ;;  %481 = vmatpush3.bf16.msra.mxu1 %v531_v10 }
  0x35   :  { %462 = vmatprep.subr.bf16.mxu0 %v596_v0  ;;  %482 = vmatprep.subr.bf16.mxu1 %v596_v0 }
  0x38   :  { %463 = vmatpush3.bf16.msra.mxu0 %v524_v7  ;;  %483 = vmatpush3.bf16.msra.mxu1 %v532_v12 }
  0x39   :  { %464 = vmatprep.subr.bf16.mxu0 %v596_v0  ;;  %484 = vmatprep.subr.bf16.mxu1 %v596_v0 }
  0x3c   :  { %465 = vmatpush3.bf16.msra.mxu0 %v525_v9  ;;  %485 = vmatpush3.bf16.msra.mxu1 %v533_v14 }
  0x3d   :  { %466 = vmatprep.subr.bf16.mxu0 %v596_v0  ;;  %486 = vmatprep.subr.bf16.mxu1 %v596_v0 }
  0x40   :  { %467 = vmatpush3.bf16.msra.mxu0 %v526_v11  ;;  %487 = vmatpush3.bf16.msra.mxu1 %v534_v16 }
  0x41   :  { %468 = vmatprep.subr.bf16.mxu0 %v596_v0  ;;  %488 = vmatprep.subr.bf16.mxu1 %v596_v0 }
  0x44   :  { %469 = vmatpush3.bf16.msra.mxu0 %v527_v13  ;;  %489 = vmatpush3.bf16.msra.mxu1 %v535_v17 }
  0x45   :  { %494 = vmatprep.subr.bf16.mxu0 %v596_v0 }
  0x47   :  { %471 = vmatmul.mubr.bf16.vlgmr.msra.gmra.mrb[0].mxu0 %v55_v15 }
  0x48   :  { %510 = vmatprep.mubr.msk.bf16.mxu0 %vm597_vm0, %v596_v0  ;;  %495 = vmatpush3.bf16.msra.mxu0 %v536_v18 }
  0x49   :  { %496 = vmatprep.subr.bf16.mxu0 %v596_v0 }
  0x4c   :  { %497 = vmatpush3.bf16.msra.mxu0 %v537_v19 }
  0x4d   :  { %498 = vmatprep.subr.bf16.mxu0 %v596_v0 }
  0x50   :  { %499 = vmatpush3.bf16.msra.mxu0 %v538_v20 }
  0x51   :  { %500 = vmatprep.subr.bf16.mxu0 %v596_v0 }
  0x54   :  { %501 = vmatpush3.bf16.msra.mxu0 %v539_v21 }
  0x55   :  { %502 = vmatprep.subr.bf16.mxu0 %v596_v0 }
  0x58   :  { %503 = vmatpush3.bf16.msra.mxu0 %v540_v22 }
  0x59   :  { %504 = vmatprep.subr.bf16.mxu0 %v596_v0 }
  0x5c   :  { %505 = vmatpush3.bf16.msra.mxu0 %v541_v23 }
  0x5d   :  { %506 = vmatprep.subr.bf16.mxu0 %v596_v0 }
  0x60   :  { %507 = vmatpush3.bf16.msra.mxu0 %v542_v32 }
  0x61   :  { %508 = vmatprep.subr.bf16.mxu0 %v596_v0 }
  0x64   :  { %509 = vmatpush3.bf16.msra.mxu0 %v543_v33 }
 0x11a   :  { %v161_v25 = vpop.f32.mrb[0].mxu0 }
 0x11b   :  { %v162_v26 = vadd.f32 %v400_v24, %v161_v25  ;;  %v472_v27 = vpop.f32.mrb[1].mxu0 }
 0x11c   :  { %v164_v28 = vpop.f32.mrb[2].mxu0 }
 0x11d   :  { %v167_v29 = vmax.f32 %v162_v26, 0.0  ;;  %v473_v30 = vpop.f32.mrb[3].mxu0 }
 0x11f   :  { %v168_v31 = vpack.c.bf16 %v167_v29, %v167_v29 }
 0x121   :  { %491 = vmatmul.mubr.bf16.vlgmr.msra.gmra.mrb[0].mxu1 %v168_v31 }
 0x1f4   :  { %v274_v35 = vpop.f32.mrb[0].mxu1 }
 0x1f5   :  { %v275_v36 = vadd.f32 %v409_v34, %v274_v35  ;;  %v492_v37 = vpop.f32.mrb[1].mxu1 }
 0x1f6   :  { %v277_v38 = vpop.f32.mrb[2].mxu1 }
 0x1f7   :  { %v280_v39 = vmax.f32 %v275_v36, 0.0  ;;  %v493_v40 = vpop.f32.mrb[3].mxu1 }
 0x1f9   :  { %v281_v41 = vpack.c.bf16 %v280_v39, %v280_v39 }
 0x1fb   :  { %511 = vmatmul.mubr.bf16.vlgmr.msra.gmra.mrb[4].mxu0 %v281_v41 }
 0x2ce   :  { %v387_v43 = vpop.f32.mrb[4].mxu0 }
 0x2cf   :  { %v388_v44 = vadd.f32 %v418_v42, %v387_v43  ;;  %v512_v45 = vpop.f32.mrb[5].mxu0 }
 0x2d0   :  { %v390_v46 = vpop.f32.mrb[6].mxu0 }
 0x2d1   :  { %393 = vst [vmem:[%s738_s7] sm:$0xff] %v388_v44  ;;  %v513_v47 = vpop.f32.mrb[7].mxu0 }
 0x2d2   :  { %398 = vsyncpa [#allocation3], 1 }
 0x2d3   :  { %399 = vsyncpa [#allocation5], 1 }

// kernel: _forward_impl.1
= control target key start
LH: loop header
LB: loop body
LE: loop exit
PB: predicated region body
PF: predicated region fallthrough
CT: control target
= control target key end

     0   :  { %12 = vsyncpa [#allocation3], 0  ;;  %s731_s0 = inlined_call_operand.vmem [shape: bf16[8,128], index: 0, kind: input, shape index: {}]   ;;  %s732_s1 = inlined_call_operand.vmem [shape: bf16[128,128], index: 1, kind: input, shape index: {}]   ;;  %s733_s2 = inlined_call_operand.vmem [shape: f32[1,128], index: 2, kind: input, shape index: {}]   ;;  %s734_s3 = inlined_call_operand.hbm [shape: bf16[128,128], index: 3, kind: input, shape index: {}]   ;;  %s735_s4 = inlined_call_operand.vmem [shape: f32[1,128], index: 4, kind: input, shape index: {}]   ;;  %s736_s5 = inlined_call_operand.hbm [shape: bf16[128,128], index: 5, kind: input, shape index: {}]   ;;  %s737_s6 = inlined_call_operand.vmem [shape: f32[1,128], index: 6, kind: input, shape index: {}]   ;;  %s738_s7 = inlined_call_operand.vmem [shape: f32[8,128], index: 7, kind: output, shape index: {}]  }
   0x1   :  { %13 = vsyncpa [#allocation5], 0  ;;  %s592_s24 = smov [#allocation2]   ;;  %s544_s28 = scalar_lea.hbm %s734_s3, 1024 }
   0x2   :  { %s25_s25 = sshll.u32 %s592_s24, 4  ;;  %p545_p0 = scmp.ne.s32.totalorder %s734_s3, %s544_s28  ;;  %s26_s25 = int_to_ptr.vmem [resolvable:$true] %s25_s25 }
   0x3   :  { %p548_p1 = scmp.lt.u32.totalorder %s544_s28, %s734_s3 }
   0x5   :  { %p550_p2 = pnand %p548_p1, %p545_p0 }
   0x7   :  { %553 = shalt.err (!%p550_p2)
}
   0x8   :  { %s554_s10 = scalar_lea.vmem %s26_s25, 1024  ;;  %p559_p4 = scmp.lt.s32.totalorder %s26_s25, %s26_s25 }
   0x9   :  { %p555_p3 = scmp.ne.s32.totalorder %s26_s25, %s554_s10  ;;  %p560_p5 = scmp.lt.s32.totalorder %s554_s10, %s554_s10 }
   0xb   :  { %p561_p6 = por %p560_p5, %p559_p4 }
   0xd   :  { %p562_p7 = pnand %p561_p6, %p555_p3 }
   0xf   :  { %565 = shalt.err (!%p562_p7)
}
  0x10   :  { %s593_s11 = smov 64   ;;  %s594_s12 = smov 4  }
  0x11   :  { %31 = dma.hbm_to_vmem [thread:$0]  %s734_s3, 1024, %s26_s25, [#allocation3], %s593_s11, %s593_s11, %s594_s12  }
  0x12   :  { %s595_s15 = smov [#allocation4]   ;;  %s566_s19 = scalar_lea.hbm %s736_s5, 1024 }
  0x13   :  { %s39_s16 = sshll.u32 %s595_s15, 4  ;;  %p567_p8 = scmp.ne.s32.totalorder %s736_s5, %s566_s19  ;;  %s40_s16 = int_to_ptr.vmem [resolvable:$true] %s39_s16 }
  0x14   :  { %p570_p9 = scmp.lt.u32.totalorder %s566_s19, %s736_s5 }
  0x16   :  { %p572_p10 = pnand %p570_p9, %p567_p8 }
  0x18   :  { %575 = shalt.err (!%p572_p10)
}
  0x19   :  { %s576_s24 = scalar_lea.vmem %s40_s16, 1024  ;;  %p581_p12 = scmp.lt.s32.totalorder %s40_s16, %s40_s16 }
  0x1a   :  { %p577_p11 = scmp.ne.s32.totalorder %s40_s16, %s576_s24  ;;  %p582_p13 = scmp.lt.s32.totalorder %s576_s24, %s576_s24 }
  0x1c   :  { %p583_p0 = por %p582_p13, %p581_p12 }
  0x1e   :  { %p584_p1 = pnand %p583_p0, %p577_p11 }
  0x20   :  { %587 = shalt.err (!%p584_p1)
}
  0x21   :  { %45 = dma.hbm_to_vmem [thread:$0]  %s736_s5, 1024, %s40_s16, [#allocation5], %s593_s11, %s593_s11, %s594_s12  }
  0x22   :  { %588 = dma.done.wait [#allocation3], 1024  }
  0x23   :  { %589 = vsyncadd [#allocation3], 4294966272 }
  0x24   :  { %590 = dma.done.wait [#allocation5], 1024  }
  0x25   :  { %591 = vsyncadd [#allocation5], 4294966272  ;;  %v596_v0 = vmov 0.0   ;;  %vm597_vm0 = vmmov 0   ;;  %v520_v1 = vld [vmem:[%s732_s1] sm:$0xff]   ;;  %v521_v2 = vld [vmem:[%s732_s1 + $0x8] sm:$0xff]  }
  0x26   :  { %454 = vmatprep.subr.bf16.mxu0 %v596_v0  ;;  %470 = vmatprep.mubr.msk.bf16.mxu0 %vm597_vm0, %v596_v0  ;;  %v522_v3 = vld [vmem:[%s732_s1 + $0x10] sm:$0xff]   ;;  %v528_v4 = vld [vmem:[#allocation2] sm:$0xff]   ;;  %v523_v5 = vld [vmem:[%s732_s1 + $0x18] sm:$0xff]  }
  0x27   :  { %474 = vmatprep.subr.bf16.mxu1 %v596_v0  ;;  %490 = vmatprep.mubr.msk.bf16.mxu1 %vm597_vm0, %v596_v0  ;;  %v529_v6 = vld [vmem:[#allocation2 + $0x8] sm:$0xff]   ;;  %v524_v7 = vld [vmem:[%s732_s1 + $0x20] sm:$0xff]   ;;  %v530_v8 = vld [vmem:[#allocation2 + $0x10] sm:$0xff]  }
  0x28   :  { %455 = vmatpush3.bf16.msra.mxu0 %v520_v1  ;;  %475 = vmatpush3.bf16.msra.mxu1 %v528_v4  ;;  %v525_v9 = vld [vmem:[%s732_s1 + $0x28] sm:$0xff]   ;;  %v531_v10 = vld [vmem:[#allocation2 + $0x18] sm:$0xff]   ;;  %v526_v11 = vld [vmem:[%s732_s1 + $0x30] sm:$0xff]  }
  0x29   :  { %456 = vmatprep.subr.bf16.mxu0 %v596_v0  ;;  %476 = vmatprep.subr.bf16.mxu1 %v596_v0  ;;  %v532_v12 = vld [vmem:[#allocation2 + $0x20] sm:$0xff]   ;;  %v527_v13 = vld [vmem:[%s732_s1 + $0x38] sm:$0xff]   ;;  %v533_v14 = vld [vmem:[#allocation2 + $0x28] sm:$0xff]  }
  0x2a   :  { %v55_v15 = vld [vmem:[%s731_s0] sm:$0xf]  ;;  %v534_v16 = vld [vmem:[#allocation2 + $0x30] sm:$0xff]   ;;  %v535_v17 = vld [vmem:[#allocation2 + $0x38] sm:$0xff]  }
  0x2b   :  { %v536_v18 = vld [vmem:[#allocation4] sm:$0xff]   ;;  %v537_v19 = vld [vmem:[#allocation4 + $0x8] sm:$0xff]   ;;  %v538_v20 = vld [vmem:[#allocation4 + $0x10] sm:$0xff]  }
  0x2c   :  { %457 = vmatpush3.bf16.msra.mxu0 %v521_v2  ;;  %477 = vmatpush3.bf16.msra.mxu1 %v529_v6  ;;  %v539_v21 = vld [vmem:[#allocation4 + $0x18] sm:$0xff]   ;;  %v540_v22 = vld [vmem:[#allocation4 + $0x20] sm:$0xff]   ;;  %v541_v23 = vld [vmem:[#allocation4 + $0x28] sm:$0xff]  }
  0x2d   :  { %458 = vmatprep.subr.bf16.mxu0 %v596_v0  ;;  %478 = vmatprep.subr.bf16.mxu1 %v596_v0  ;;  %v400_v24 = vld [vmem:[%s733_s2] ss:$0 sm:$0xff]  ;;  %v542_v32 = vld [vmem:[#allocation4 + $0x30] sm:$0xff]   ;;  %v543_v33 = vld [vmem:[#allocation4 + $0x38] sm:$0xff]  }
  0x2e   :  { %v409_v34 = vld [vmem:[%s735_s4] ss:$0 sm:$0xff] }
  0x2f   :  { %v418_v42 = vld [vmem:[%s737_s6] ss:$0 sm:$0xff] }
  0x30   :  { %459 = vmatpush3.bf16.msra.mxu0 %v522_v3  ;;  %479 = vmatpush3.bf16.msra.mxu1 %v530_v8 }
  0x31   :  { %460 = vmatprep.subr.bf16.mxu0 %v596_v0  ;;  %480 = vmatprep.subr.bf16.mxu1 %v596_v0 }
  0x34   :  { %461 = vmatpush3.bf16.msra.mxu0 %v523_v5  ;;  %481 = vmatpush3.bf16.msra.mxu1 %v531_v10 }
  0x35   :  { %462 = vmatprep.subr.bf16.mxu0 %v596_v0  ;;  %482 = vmatprep.subr.bf16.mxu1 %v596_v0 }
  0x38   :  { %463 = vmatpush3.bf16.msra.mxu0 %v524_v7  ;;  %483 = vmatpush3.bf16.msra.mxu1 %v532_v12 }
  0x39   :  { %464 = vmatprep.subr.bf16.mxu0 %v596_v0  ;;  %484 = vmatprep.subr.bf16.mxu1 %v596_v0 }
  0x3c   :  { %465 = vmatpush3.bf16.msra.mxu0 %v525_v9  ;;  %485 = vmatpush3.bf16.msra.mxu1 %v533_v14 }
  0x3d   :  { %466 = vmatprep.subr.bf16.mxu0 %v596_v0  ;;  %486 = vmatprep.subr.bf16.mxu1 %v596_v0 }
  0x40   :  { %467 = vmatpush3.bf16.msra.mxu0 %v526_v11  ;;  %487 = vmatpush3.bf16.msra.mxu1 %v534_v16 }
  0x41   :  { %468 = vmatprep.subr.bf16.mxu0 %v596_v0  ;;  %488 = vmatprep.subr.bf16.mxu1 %v596_v0 }
  0x44   :  { %469 = vmatpush3.bf16.msra.mxu0 %v527_v13  ;;  %489 = vmatpush3.bf16.msra.mxu1 %v535_v17 }
  0x45   :  { %494 = vmatprep.subr.bf16.mxu0 %v596_v0 }
  0x47   :  { %471 = vmatmul.mubr.bf16.vlgmr.msra.gmra.mrb[0].mxu0 %v55_v15 }
  0x48   :  { %510 = vmatprep.mubr.msk.bf16.mxu0 %vm597_vm0, %v596_v0  ;;  %495 = vmatpush3.bf16.msra.mxu0 %v536_v18 }
  0x49   :  { %496 = vmatprep.subr.bf16.mxu0 %v596_v0 }
  0x4c   :  { %497 = vmatpush3.bf16.msra.mxu0 %v537_v19 }
  0x4d   :  { %498 = vmatprep.subr.bf16.mxu0 %v596_v0 }
  0x50   :  { %499 = vmatpush3.bf16.msra.mxu0 %v538_v20 }
  0x51   :  { %500 = vmatprep.subr.bf16.mxu0 %v596_v0 }
  0x54   :  { %501 = vmatpush3.bf16.msra.mxu0 %v539_v21 }
  0x55   :  { %502 = vmatprep.subr.bf16.mxu0 %v596_v0 }
  0x58   :  { %503 = vmatpush3.bf16.msra.mxu0 %v540_v22 }
  0x59   :  { %504 = vmatprep.subr.bf16.mxu0 %v596_v0 }
  0x5c   :  { %505 = vmatpush3.bf16.msra.mxu0 %v541_v23 }
  0x5d   :  { %506 = vmatprep.subr.bf16.mxu0 %v596_v0 }
  0x60   :  { %507 = vmatpush3.bf16.msra.mxu0 %v542_v32 }
  0x61   :  { %508 = vmatprep.subr.bf16.mxu0 %v596_v0 }
  0x64   :  { %509 = vmatpush3.bf16.msra.mxu0 %v543_v33 }
 0x11a   :  { %v161_v25 = vpop.f32.mrb[0].mxu0 }
 0x11b   :  { %v162_v26 = vadd.f32 %v400_v24, %v161_v25  ;;  %v472_v27 = vpop.f32.mrb[1].mxu0 }
 0x11c   :  { %v164_v28 = vpop.f32.mrb[2].mxu0 }
 0x11d   :  { %v167_v29 = vmax.f32 %v162_v26, 0.0  ;;  %v473_v30 = vpop.f32.mrb[3].mxu0 }
 0x11f   :  { %v168_v31 = vpack.c.bf16 %v167_v29, %v167_v29 }
 0x121   :  { %491 = vmatmul.mubr.bf16.vlgmr.msra.gmra.mrb[0].mxu1 %v168_v31 }
 0x1f4   :  { %v274_v35 = vpop.f32.mrb[0].mxu1 }
 0x1f5   :  { %v275_v36 = vadd.f32 %v409_v34, %v274_v35  ;;  %v492_v37 = vpop.f32.mrb[1].mxu1 }
 0x1f6   :  { %v277_v38 = vpop.f32.mrb[2].mxu1 }
 0x1f7   :  { %v280_v39 = vmax.f32 %v275_v36, 0.0  ;;  %v493_v40 = vpop.f32.mrb[3].mxu1 }
 0x1f9   :  { %v281_v41 = vpack.c.bf16 %v280_v39, %v280_v39 }
 0x1fb   :  { %511 = vmatmul.mubr.bf16.vlgmr.msra.gmra.mrb[4].mxu0 %v281_v41 }
 0x2ce   :  { %v387_v43 = vpop.f32.mrb[4].mxu0 }
 0x2cf   :  { %v388_v44 = vadd.f32 %v418_v42, %v387_v43  ;;  %v512_v45 = vpop.f32.mrb[5].mxu0 }
 0x2d0   :  { %v390_v46 = vpop.f32.mrb[6].mxu0 }
 0x2d1   :  { %393 = vst [vmem:[%s738_s7] sm:$0xff] %v388_v44  ;;  %v513_v47 = vpop.f32.mrb[7].mxu0 }
 0x2d2   :  { %398 = vsyncpa [#allocation3], 1 }
 0x2d3   :  { %399 = vsyncpa [#allocation5], 1 }

</bundles_post_ra>
